<compile_context>
chip_gen: v7x
topology: tpu7x:2x2x1
jax: 0.10.0
libtpu: 0.0.40
codegen_flags: <defaults>
</compile_context>

<pallas_src>
import math

import jax
import jax.numpy as jnp
from jax import lax
from jax.experimental import pallas as pl
from jax.experimental.pallas import tpu as pltpu


# ---------------------------------------------------------------------------
# Kernels
# ---------------------------------------------------------------------------

def _zero(ref):
    ref[...] = jnp.zeros(ref.shape, dtype=ref.dtype)


def _noisy_dense_kernel(x_ref, wmu_ref, wsig_ref, eout_ref, ein_ref,
                        bmu_ref, bsig_ref, beps_ref, o_ref, *scratch):
    """Large-batch path: acc += x @ (mu + sigma * (eps_out outer eps_in)).T.

    eout_ref is a (tn, 1) column factor, ein_ref a (1, tk) row factor; the dense (tn, tk)
    noise tile is rebuilt on the VPU every step and never streamed from HBM. When no
    scratch is passed, the f32 output block itself is the accumulator (its block index is
    k-invariant so it stays resident across the reduction axis).
    """
    acc_ref = scratch[0] if scratch else o_ref
    k = pl.program_id(2)

    @pl.when(k == 0)
    def _():
        _zero(acc_ref)

    wmu = wmu_ref[...]
    eps = (eout_ref[...] * ein_ref[...]).astype(wmu.dtype)      # (tn,1)*(1,tk) -> (tn,tk)
    w = wmu + wsig_ref[...] * eps
    acc_ref[...] += lax.dot_general(
        x_ref[...], w,
        dimension_numbers=(((1,), (1,)), ((), ())),             # contract K of both
        preferred_element_type=jnp.float32)

    @pl.when(k == pl.num_programs(2) - 1)
    def _():
        bias = bmu_ref[...] + bsig_ref[...] * beps_ref[...]     # (1, tn) f32
        if scratch:
            o_ref[...] = (acc_ref[...] + bias).astype(o_ref.dtype)
        else:
            o_ref[...] += bias


def _noisy_factored_kernel(x_ref, wmu_ref, wsig_ref, ein_ref, eout_ref,
                           bmu_ref, bsig_ref, beps_ref, o_ref, *scratch):
    """Small-batch path: y = x@mu.T + eps_out * ((x*eps_in)@sigma.T) + bias.

    Moves the elementwise noise work from the (tn, tk) weight tile to the (tb, tk) input
    tile; epsilon_out and the bias vectors are consumed lane-major (1, tn).
    """
    if len(scratch) == 2:
        acc_mu, acc_sig = scratch
    else:
        acc_mu, acc_sig = o_ref, scratch[0]
    k = pl.program_id(2)

    @pl.when(k == 0)
    def _():
        _zero(acc_mu)
        _zero(acc_sig)

    x = x_ref[...]
    acc_mu[...] += lax.dot_general(
        x, wmu_ref[...],
        dimension_numbers=(((1,), (1,)), ((), ())),
        preferred_element_type=jnp.float32)
    xs = x * ein_ref[...].astype(x.dtype)                       # (tb,tk) * eps_in row
    acc_sig[...] += lax.dot_general(
        xs, wsig_ref[...],
        dimension_numbers=(((1,), (1,)), ((), ())),
        preferred_element_type=jnp.float32)

    @pl.when(k == pl.num_programs(2) - 1)
    def _():
        bias = bmu_ref[...] + bsig_ref[...] * beps_ref[...]     # (1, tn)
        y = acc_mu[...] + eout_ref[...] * acc_sig[...] + bias
        o_ref[...] = y.astype(o_ref.dtype)


def _noisy_eval_kernel(x_ref, wmu_ref, bmu_ref, o_ref, *scratch):
    """Eval mode: y = x @ mu.T + bias_mu. Sigma / epsilon streams never touched."""
    acc_ref = scratch[0] if scratch else o_ref
    k = pl.program_id(2)

    @pl.when(k == 0)
    def _():
        _zero(acc_ref)

    acc_ref[...] += lax.dot_general(
        x_ref[...], wmu_ref[...],
        dimension_numbers=(((1,), (1,)), ((), ())),
        preferred_element_type=jnp.float32)

    @pl.when(k == pl.num_programs(2) - 1)
    def _():
        if scratch:
            o_ref[...] = (acc_ref[...] + bmu_ref[...]).astype(o_ref.dtype)
        else:
            o_ref[...] += bmu_ref[...]


# ---------------------------------------------------------------------------
# Wrapper
# ---------------------------------------------------------------------------

def _round_up(x, m):
    return (x + m - 1) // m * m


def _pick_tile(padded_dim, align, cap):
    """Largest multiple of `align` that divides `padded_dim` and is <= cap (>= align)."""
    best = align
    t = align
    limit = min(padded_dim, max(cap, align))
    while t <= limit:
        if padded_dim % t == 0:
            best = t
        t += align
    return best


def _pad2(a, rows, cols):
    pr, pc = rows - a.shape[0], cols - a.shape[1]
    if pr or pc:
        a = jnp.pad(a, ((0, pr), (0, pc)))
    return a


def _vmem_capacity_bytes():
    try:
        return int(pltpu.get_tpu_info().vmem_capacity_bytes)
    except Exception:                 # interpret mode / older runtimes: assume smallest part
        return 64 * 1024 * 1024       # v7x per-TensorCore VMEM


def noisy_linear(x, weight_mu, weight_sigma, bias_mu, bias_sigma,
                 epsilon_in, epsilon_out, bias_epsilon=None, *,
                 training=True, compute_dtype=None, factored=None,
                 block_b=512, block_n=512, block_k=None,
                 vmem_limit_bytes=None):
    """Pallas NoisyLinear forward.

    x: (B, K); weight_{mu,sigma}: (N, K); bias_{mu,sigma}: (N,); epsilon_in: (K,);
    epsilon_out: (N,). bias_epsilon defaults to epsilon_out (as set by reset_noise()).
    compute_dtype (e.g. jnp.bfloat16) is the dtype x / weight streams are fed to the MXU
    in; accumulation is always f32. Returns (B, N) in x.dtype.
    """
    if bias_epsilon is None:
        bias_epsilon = epsilon_out

    B, K = x.shape
    N, K2 = weight_mu.shape
    assert K2 == K, "weight_mu must be (out_features, in_features)"
    out_dtype = x.dtype

    if compute_dtype is None:
        compute_dtype = x.dtype
    compute_dtype = jnp.dtype(compute_dtype)
    itemsize = compute_dtype.itemsize
    out_itemsize = jnp.dtype(out_dtype).itemsize
    sublane = max(8, 32 // max(itemsize, 1))           # f32 -> 8, bf16 -> 16

    vmem_cap = _vmem_capacity_bytes()
    if block_k is None:
        # Deep K tiles on 128-MiB-VMEM parts (v5e/v6e); tighter cap on 64-MiB v7x.
        big_vmem = vmem_cap >= 96 * 1024 * 1024
        block_k = 2048 if (itemsize <= 2 or big_vmem) else 1024

    # N/K tiles are divisors of the 128-aligned dims -> the weight pad below is a no-op
    # whenever N, K are multiples of 128. B is padded instead (cheap, keeps tb large).
    K_pad = _round_up(K, 128)
    N_pad = _round_up(N, 128)
    tk = _pick_tile(K_pad, 128, block_k)
    tn = _pick_tile(N_pad, 128, block_n)
    tb = min(_round_up(B, sublane), max(sublane, block_b // sublane * sublane))
    B_pad = _round_up(B, tb)

    # Expose >= 2 parallel (B, N) tiles so both TensorCores of dual-core parts (v7x) get
    # work via "parallel" grid axes; negligible cost on single-core parts.
    if (B_pad // tb) * (N_pad // tn) < 2:
        if tn >= 256:
            tn = _pick_tile(N_pad, 128, tn // 2)
        elif tb % (2 * sublane) == 0:
            tb //= 2

    grid = (B_pad // tb, N_pad // tn, K_pad // tk)     # K (reduction) axis last

    if factored is None:
        # Below tb ~ 128 the dense per-step noise rebuild saturates the VPU before the
        # MXU; use the two-matmul factorized form there.
        factored = training and tb < 128

    acc_in_out = jnp.dtype(out_dtype) == jnp.dtype(jnp.float32)

    # Operand prep (weight pads/casts are no-ops for aligned dims / matching dtypes;
    # for odd N/K or bf16 storage, prepare the parameters once at init instead).
    x_p = _pad2(x.astype(compute_dtype), B_pad, K_pad)
    wmu_p = _pad2(weight_mu.astype(compute_dtype), N_pad, K_pad)
    bmu_p = _pad2(bias_mu.reshape(1, N).astype(jnp.float32), 1, N_pad)

    n_w = 2 if training else 1
    n_acc = (0 if acc_in_out else 1) + (1 if (training and factored) else 0)
    est = (2 * (tb * tk * itemsize + n_w * tn * tk * itemsize + tb * tn * out_itemsize)
           + n_acc * tb * tn * 4 + (4 << 20))          # + rows/cols & compiler headroom
    if vmem_limit_bytes is None:
        vmem_limit_bytes = int(min(max(32 << 20, est), int(0.9 * vmem_cap), 112 << 20))

    compiler_params = pltpu.CompilerParams(
        dimension_semantics=("parallel", "parallel", "arbitrary"),
        vmem_limit_bytes=int(vmem_limit_bytes))

    x_spec = pl.BlockSpec((tb, tk), lambda b, n, k: (b, k))
    w_spec = pl.BlockSpec((tn, tk), lambda b, n, k: (n, k))
    row_n_spec = pl.BlockSpec((1, tn), lambda b, n, k: (0, n))
    row_k_spec = pl.BlockSpec((1, tk), lambda b, n, k: (0, k))
    out_spec = pl.BlockSpec((tb, tn), lambda b, n, k: (b, n))
    acc = lambda: pltpu.VMEM((tb, tn), jnp.float32)

    if not training:
        out = pl.pallas_call(
            _noisy_eval_kernel,
            out_shape=jax.ShapeDtypeStruct((B_pad, N_pad), out_dtype),
            grid_spec=pltpu.PrefetchScalarGridSpec(
                num_scalar_prefetch=0, grid=grid,
                in_specs=[x_spec, w_spec, row_n_spec],
                out_specs=out_spec,
                scratch_shapes=[] if acc_in_out else [acc()]),
            compiler_params=compiler_params,
        )(x_p, wmu_p, bmu_p)
        return out[:B, :N]

    wsig_p = _pad2(weight_sigma.astype(compute_dtype), N_pad, K_pad)
    bsig_p = _pad2(bias_sigma.reshape(1, N).astype(jnp.float32), 1, N_pad)
    beps_p = _pad2(bias_epsilon.reshape(1, N).astype(jnp.float32), 1, N_pad)
    ein_p = _pad2(epsilon_in.reshape(1, K).astype(jnp.float32), 1, K_pad)

    if factored:
        eout_row = _pad2(epsilon_out.reshape(1, N).astype(jnp.float32), 1, N_pad)
        out = pl.pallas_call(
            _noisy_factored_kernel,
            out_shape=jax.ShapeDtypeStruct((B_pad, N_pad), out_dtype),
            grid_spec=pltpu.PrefetchScalarGridSpec(
                num_scalar_prefetch=0, grid=grid,
                in_specs=[x_spec, w_spec, w_spec, row_k_spec, row_n_spec,
                          row_n_spec, row_n_spec, row_n_spec],
                out_specs=out_spec,
                scratch_shapes=[acc()] if acc_in_out else [acc(), acc()]),
            compiler_params=compiler_params,
        )(x_p, wmu_p, wsig_p, ein_p, eout_row, bmu_p, bsig_p, beps_p)
    else:
        eout_col = _pad2(epsilon_out.reshape(N, 1).astype(jnp.float32), N_pad, 1)
        out = pl.pallas_call(
            _noisy_dense_kernel,
            out_shape=jax.ShapeDtypeStruct((B_pad, N_pad), out_dtype),
            grid_spec=pltpu.PrefetchScalarGridSpec(
                num_scalar_prefetch=0, grid=grid,
                in_specs=[x_spec, w_spec, w_spec,
                          pl.BlockSpec((tn, 1), lambda b, n, k: (n, 0)),
                          row_k_spec, row_n_spec, row_n_spec, row_n_spec],
                out_specs=out_spec,
                scratch_shapes=[] if acc_in_out else [acc()]),
            compiler_params=compiler_params,
        )(x_p, wmu_p, wsig_p, eout_col, ein_p, bmu_p, bsig_p, beps_p)
    return out[:B, :N]


# ---------------------------------------------------------------------------
# Parameter init (mirrors reset_parameters / reset_noise, deterministic) + reference
# ---------------------------------------------------------------------------

def _scale_noise(key, size):
    x = jax.random.normal(key, (size,), dtype=jnp.float32)
    return jnp.sign(x) * jnp.sqrt(jnp.abs(x))


def init_noisy_linear(key, in_features, out_features, std_init=0.5):
    k_wmu, k_bmu, k_ein, k_eout = jax.random.split(key, 4)
    mu_range = 1.0 / math.sqrt(in_features)
    weight_mu = jax.random.uniform(k_wmu, (out_features, in_features), jnp.float32,
                                   -mu_range, mu_range)
    weight_sigma = jnp.full((out_features, in_features),
                            std_init / math.sqrt(in_features), jnp.float32)
    bias_mu = jax.random.uniform(k_bmu, (out_features,), jnp.float32,
                                 -mu_range, mu_range)
    bias_sigma = jnp.full((out_features,), std_init / math.sqrt(out_features),
                          jnp.float32)
    epsilon_in = _scale_noise(k_ein, in_features)
    epsilon_out = _scale_noise(k_eout, out_features)
    return dict(weight_mu=weight_mu, weight_sigma=weight_sigma,
                weight_epsilon=jnp.outer(epsilon_out, epsilon_in),
                bias_mu=bias_mu, bias_sigma=bias_sigma, bias_epsilon=epsilon_out,
                epsilon_in=epsilon_in, epsilon_out=epsilon_out)


def _reference(x, p, training=True):
    if training:
        w = p["weight_mu"] + p["weight_sigma"] * p["weight_epsilon"]
        b = p["bias_mu"] + p["bias_sigma"] * p["bias_epsilon"]
    else:
        w = p["weight_mu"]
        b = p["bias_mu"]
    return jnp.dot(x, w.T, precision=jax.lax.Precision.HIGHEST) + b


def _run(x, p, **kw):
    return jax.block_until_ready(noisy_linear(
        x, p["weight_mu"], p["weight_sigma"], p["bias_mu"], p["bias_sigma"],
        p["epsilon_in"], p["epsilon_out"], **kw))


# ---------------------------------------------------------------------------
# Smoke test
# ---------------------------------------------------------------------------

if __name__ == "__main__":
    key = jax.random.PRNGKey(0)
    k_p1, k_x1, k_p2, k_x2 = jax.random.split(key, 4)

    # Case 1: tiny layer (single tile after (8,128) padding); factored small-batch path
    # accumulating straight into the f32 output block, plus the eval path.
    p1 = init_noisy_linear(k_p1, 32, 16)
    x1 = jax.random.normal(k_x1, (4, 32), dtype=jnp.float32)
    out = _run(x1, p1, training=True)
    assert out.shape == (4, 16)
    assert jnp.allclose(out, _reference(x1, p1, True), atol=2e-3, rtol=2e-3), "case1 train"
    out = _run(x1, p1, training=False)
    assert jnp.allclose(out, _reference(x1, p1, False), atol=2e-3, rtol=2e-3), "case1 eval"

    # Case 2: multi-tile grid (B, N, K all tiled; K-axis accumulation), factored path.
    p2 = init_noisy_linear(k_p2, 256, 384)
    x2 = jax.random.normal(k_x2, (16, 256), dtype=jnp.float32)
    ref2 = _reference(x2, p2, True)
    out = _run(x2, p2, training=True, block_b=8, block_n=128, block_k=128)
    assert out.shape == (16, 384)
    assert jnp.allclose(out, ref2, atol=2e-3, rtol=2e-3), "case2 factored"

    # Case 3: same layer with the dense (single-matmul, rank-1 rebuild) kernel forced;
    # also exercises the dual-core N split (grid becomes (1, >=2, K)).
    out = _run(x2, p2, training=True, factored=False)
    assert jnp.allclose(out, ref2, atol=2e-3, rtol=2e-3), "case3 dense"

    # Case 4: bf16 streaming path (bf16 x/weights on the MXU, f32 accumulator, bf16 out)
    # -> exercises the scratch accumulators and 16-sublane tiling. Looser tolerance.
    out = _run(x2.astype(jnp.bfloat16), p2, training=True, compute_dtype=jnp.bfloat16)
    assert out.dtype == jnp.bfloat16
    assert jnp.allclose(out.astype(jnp.float32), ref2, atol=8e-2, rtol=8e-2), "case4 bf16"

    print("KERNEL_OK")
</pallas_src>

<mosaic_0001>
module attributes {stable_mosaic.version = 11 : i64} {
  func.func @_noisy_factored_kernel(%arg0: i32, %arg1: i32, %arg2: i32, %arg3: memref<8x128xf32, #tpu.memory_space<vmem>>, %arg4: memref<128x128xf32, #tpu.memory_space<vmem>>, %arg5: memref<128x128xf32, #tpu.memory_space<vmem>>, %arg6: memref<1x128xf32, #tpu.memory_space<vmem>>, %arg7: memref<1x128xf32, #tpu.memory_space<vmem>>, %arg8: memref<1x128xf32, #tpu.memory_space<vmem>>, %arg9: memref<1x128xf32, #tpu.memory_space<vmem>>, %arg10: memref<1x128xf32, #tpu.memory_space<vmem>>, %arg11: memref<8x128xf32, #tpu.memory_space<vmem>>, %arg12: memref<8x128xf32, #tpu.memory_space<vmem>>) attributes {dimension_semantics = [#tpu.dimension_semantics<parallel>, #tpu.dimension_semantics<parallel>, #tpu.dimension_semantics<arbitrary>], iteration_bounds = array<i64: 1, 1, 1>, scalar_prefetch = 0 : i64, scratch_operands = 1 : i64, tpu.core_type = #tpu.core_type<tc>, window_params = [{transform_indices = @transform_0, window_bounds = array<i64: 8, 128>}, {transform_indices = @transform_1, window_bounds = array<i64: 128, 128>}, {transform_indices = @transform_2, window_bounds = array<i64: 128, 128>}, {transform_indices = @transform_3, window_bounds = array<i64: 1, 128>}, {transform_indices = @transform_4, window_bounds = array<i64: 1, 128>}, {transform_indices = @transform_5, window_bounds = array<i64: 1, 128>}, {transform_indices = @transform_6, window_bounds = array<i64: 1, 128>}, {transform_indices = @transform_7, window_bounds = array<i64: 1, 128>}, {transform_indices = @transform_8, window_bounds = array<i64: 8, 128>}]} {
    %c0_i32 = arith.constant 0 : i32
    %0 = arith.cmpi eq, %arg2, %c0_i32 : i32
    %1 = arith.extui %0 : i1 to i32
    %c0_i32_0 = arith.constant 0 : i32
    %2 = arith.cmpi ne, %1, %c0_i32_0 : i32
    scf.if %2 {
      %cst_19 = arith.constant 0.000000e+00 : f32
      %20 = vector.broadcast %cst_19 : f32 to vector<8x128xf32>
      %c0_20 = arith.constant 0 : index
      %c0_21 = arith.constant 0 : index
      %21 = vector.load %arg11[%c0_20, %c0_21] : memref<8x128xf32, #tpu.memory_space<vmem>>, vector<8x128xf32>
      tpu.vector_store %arg11[%c0_20, %c0_21], %20 {strides = array<i32>} : memref<8x128xf32, #tpu.memory_space<vmem>>, vector<8x128xf32>,
      %cst_22 = arith.constant 0.000000e+00 : f32
      %22 = vector.broadcast %cst_22 : f32 to vector<8x128xf32>
      %c0_23 = arith.constant 0 : index
      %c0_24 = arith.constant 0 : index
      %23 = vector.load %arg12[%c0_23, %c0_24] : memref<8x128xf32, #tpu.memory_space<vmem>>, vector<8x128xf32>
      tpu.vector_store %arg12[%c0_23, %c0_24], %22 {strides = array<i32>} : memref<8x128xf32, #tpu.memory_space<vmem>>, vector<8x128xf32>,
    } else {
    }
    %c0 = arith.constant 0 : index
    %c0_1 = arith.constant 0 : index
    %3 = vector.load %arg3[%c0, %c0_1] : memref<8x128xf32, #tpu.memory_space<vmem>>, vector<8x128xf32>
    %c0_2 = arith.constant 0 : index
    %c0_3 = arith.constant 0 : index
    %4 = vector.load %arg11[%c0_2, %c0_3] : memref<8x128xf32, #tpu.memory_space<vmem>>, vector<8x128xf32>
    %c0_4 = arith.constant 0 : index
    %c0_5 = arith.constant 0 : index
    %5 = vector.load %arg4[%c0_4, %c0_5] : memref<128x128xf32, #tpu.memory_space<vmem>>, vector<128x128xf32>
    %cst = arith.constant dense<0.000000e+00> : vector<8x128xf32>
    %6 = tpu.matmul %3, %5, %cst {dimension_numbers = #tpu.dot_dimension_numbers<[1], [1], [0], [0], [0, 0, 1, 0], [], []>} : vector<8x128xf32>, vector<128x128xf32>, vector<8x128xf32> -> vector<8x128xf32>
    %7 = arith.addf %4, %6 : vector<8x128xf32>
    %c0_6 = arith.constant 0 : index
    %c0_7 = arith.constant 0 : index
    %8 = vector.load %arg11[%c0_6, %c0_7] : memref<8x128xf32, #tpu.memory_space<vmem>>, vector<8x128xf32>
    tpu.vector_store %arg11[%c0_6, %c0_7], %7 {strides = array<i32>} : memref<8x128xf32, #tpu.memory_space<vmem>>, vector<8x128xf32>,
    %c0_8 = arith.constant 0 : index
    %c0_9 = arith.constant 0 : index
    %9 = vector.load %arg6[%c0_8, %c0_9] : memref<1x128xf32, #tpu.memory_space<vmem>>, vector<1x128xf32>
    %10 = vector.broadcast %9 : vector<1x128xf32> to vector<8x128xf32>
    %11 = arith.mulf %3, %10 : vector<8x128xf32>
    %c0_10 = arith.constant 0 : index
    %c0_11 = arith.constant 0 : index
    %12 = vector.load %arg12[%c0_10, %c0_11] : memref<8x128xf32, #tpu.memory_space<vmem>>, vector<8x128xf32>
    %c0_12 = arith.constant 0 : index
    %c0_13 = arith.constant 0 : index
    %13 = vector.load %arg5[%c0_12, %c0_13] : memref<128x128xf32, #tpu.memory_space<vmem>>, vector<128x128xf32>
    %cst_14 = arith.constant dense<0.000000e+00> : vector<8x128xf32>
    %14 = tpu.matmul %11, %13, %cst_14 {dimension_numbers = #tpu.dot_dimension_numbers<[1], [1], [0], [0], [0, 0, 1, 0], [], []>} : vector<8x128xf32>, vector<128x128xf32>, vector<8x128xf32> -> vector<8x128xf32>
    %15 = arith.addf %12, %14 : vector<8x128xf32>
    %c0_15 = arith.constant 0 : index
    %c0_16 = arith.constant 0 : index
    %16 = vector.load %arg12[%c0_15, %c0_16] : memref<8x128xf32, #tpu.memory_space<vmem>>, vector<8x128xf32>
    tpu.vector_store %arg12[%c0_15, %c0_16], %15 {strides = array<i32>} : memref<8x128xf32, #tpu.memory_space<vmem>>, vector<8x128xf32>,
    %c0_i32_17 = arith.constant 0 : i32
    %17 = arith.cmpi eq, %arg2, %c0_i32_17 : i32
    %18 = arith.extui %17 : i1 to i32
    %c0_i32_18 = arith.constant 0 : i32
    %19 = arith.cmpi ne, %18, %c0_i32_18 : i32
    scf.if %19 {
      %c0_19 = arith.constant 0 : index
      %c0_20 = arith.constant 0 : index
      %20 = vector.load %arg8[%c0_19, %c0_20] : memref<1x128xf32, #tpu.memory_space<vmem>>, vector<1x128xf32>
      %c0_21 = arith.constant 0 : index
      %c0_22 = arith.constant 0 : index
      %21 = vector.load %arg9[%c0_21, %c0_22] : memref<1x128xf32, #tpu.memory_space<vmem>>, vector<1x128xf32>
      %c0_23 = arith.constant 0 : index
      %c0_24 = arith.constant 0 : index
      %22 = vector.load %arg10[%c0_23, %c0_24] : memref<1x128xf32, #tpu.memory_space<vmem>>, vector<1x128xf32>
      %23 = arith.mulf %21, %22 : vector<1x128xf32>
      %24 = arith.addf %20, %23 : vector<1x128xf32>
      %c0_25 = arith.constant 0 : index
      %c0_26 = arith.constant 0 : index
      %25 = vector.load %arg11[%c0_25, %c0_26] : memref<8x128xf32, #tpu.memory_space<vmem>>, vector<8x128xf32>
      %c0_27 = arith.constant 0 : index
      %c0_28 = arith.constant 0 : index
      %26 = vector.load %arg7[%c0_27, %c0_28] : memref<1x128xf32, #tpu.memory_space<vmem>>, vector<1x128xf32>
      %c0_29 = arith.constant 0 : index
      %c0_30 = arith.constant 0 : index
      %27 = vector.load %arg12[%c0_29, %c0_30] : memref<8x128xf32, #tpu.memory_space<vmem>>, vector<8x128xf32>
      %28 = vector.broadcast %26 : vector<1x128xf32> to vector<8x128xf32>
      %29 = arith.mulf %28, %27 : vector<8x128xf32>
      %30 = arith.addf %25, %29 : vector<8x128xf32>
      %31 = vector.broadcast %24 : vector<1x128xf32> to vector<8x128xf32>
      %32 = arith.addf %30, %31 : vector<8x128xf32>
      %c0_31 = arith.constant 0 : index
      %c0_32 = arith.constant 0 : index
      %33 = vector.load %arg11[%c0_31, %c0_32] : memref<8x128xf32, #tpu.memory_space<vmem>>, vector<8x128xf32>
      tpu.vector_store %arg11[%c0_31, %c0_32], %32 {strides = array<i32>} : memref<8x128xf32, #tpu.memory_space<vmem>>, vector<8x128xf32>,
    } else {
    }
    return
  }
  func.func @transform_0(%arg0: i32, %arg1: i32, %arg2: i32) -> (i32, i32) {
    %c0_i32 = arith.constant 0 : i32
    return %arg0, %arg2 : i32, i32
  }
  func.func @transform_1(%arg0: i32, %arg1: i32, %arg2: i32) -> (i32, i32) {
    %c0_i32 = arith.constant 0 : i32
    return %arg1, %arg2 : i32, i32
  }
  func.func @transform_2(%arg0: i32, %arg1: i32, %arg2: i32) -> (i32, i32) {
    %c0_i32 = arith.constant 0 : i32
    return %arg1, %arg2 : i32, i32
  }
  func.func @transform_3(%arg0: i32, %arg1: i32, %arg2: i32) -> (i32, i32) {
    %c0_i32 = arith.constant 0 : i32
    %c0_i32_0 = arith.constant 0 : i32
    return %c0_i32, %arg2 : i32, i32
  }
  func.func @transform_4(%arg0: i32, %arg1: i32, %arg2: i32) -> (i32, i32) {
    %c0_i32 = arith.constant 0 : i32
    %c0_i32_0 = arith.constant 0 : i32
    return %c0_i32, %arg1 : i32, i32
  }
  func.func @transform_5(%arg0: i32, %arg1: i32, %arg2: i32) -> (i32, i32) {
    %c0_i32 = arith.constant 0 : i32
    %c0_i32_0 = arith.constant 0 : i32
    return %c0_i32, %arg1 : i32, i32
  }
  func.func @transform_6(%arg0: i32, %arg1: i32, %arg2: i32) -> (i32, i32) {
    %c0_i32 = arith.constant 0 : i32
    %c0_i32_0 = arith.constant 0 : i32
    return %c0_i32, %arg1 : i32, i32
  }
  func.func @transform_7(%arg0: i32, %arg1: i32, %arg2: i32) -> (i32, i32) {
    %c0_i32 = arith.constant 0 : i32
    %c0_i32_0 = arith.constant 0 : i32
    return %c0_i32, %arg1 : i32, i32
  }
  func.func @transform_8(%arg0: i32, %arg1: i32, %arg2: i32) -> (i32, i32) {
    %c0_i32 = arith.constant 0 : i32
    return %arg0, %arg1 : i32, i32
  }
}

</mosaic_0001>

<bundles_post_ra>
// kernel: tpu_custom_call.1
= control target key start
LH: loop header
LB: loop body
LE: loop exit
PB: predicated region body
PF: predicated region fallthrough
CT: control target
= control target key end

     0   :  { %13 = vsyncpa [#allocation4], 0  ;;  %s701_s0 = inlined_call_operand.hbm [shape: f32[8,128], index: 0, kind: input, shape index: {}]   ;;  %s702_s1 = inlined_call_operand.hbm [shape: f32[128,128], index: 1, kind: input, shape index: {}]   ;;  %s703_s2 = inlined_call_operand.hbm [shape: f32[128,128], index: 2, kind: input, shape index: {}]   ;;  %s704_s3 = inlined_call_operand.vmem [shape: f32[1,128], index: 3, kind: input, shape index: {}]   ;;  %s705_s4 = inlined_call_operand.vmem [shape: f32[1,128], index: 4, kind: input, shape index: {}]   ;;  %s706_s5 = inlined_call_operand.vmem [shape: f32[1,128], index: 5, kind: input, shape index: {}]   ;;  %s707_s6 = inlined_call_operand.vmem [shape: f32[1,128], index: 6, kind: input, shape index: {}]   ;;  %s708_s7 = inlined_call_operand.vmem [shape: f32[1,128], index: 7, kind: input, shape index: {}]   ;;  %s709_s8 = inlined_call_operand.hbm [shape: f32[8,128], index: 8, kind: output, shape index: {}]  }
   0x1   :  { %14 = vsyncpa [#allocation7], 0 }
   0x2   :  { %15 = vsyncpa [#allocation5], 0  ;;  %s562_s27 = smov [#allocation6]   ;;  %s468_s9 = scalar_lea.hbm %s702_s1, 2048 }
   0x3   :  { %s31_s28 = sshll.u32 %s562_s27, 4  ;;  %p469_p0 = scmp.ne.s32.totalorder %s702_s1, %s468_s9  ;;  %s32_s28 = int_to_ptr.vmem [resolvable:$true] %s31_s28 }
   0x4   :  { %p472_p1 = scmp.lt.u32.totalorder %s468_s9, %s702_s1 }
   0x6   :  { %p474_p2 = pnand %p472_p1, %p469_p0 }
   0x8   :  { %477 = shalt.err (!%p474_p2)
}
   0x9   :  { %s478_s14 = scalar_lea.vmem %s32_s28, 2048  ;;  %p483_p4 = scmp.lt.s32.totalorder %s32_s28, %s32_s28 }
   0xa   :  { %p479_p3 = scmp.ne.s32.totalorder %s32_s28, %s478_s14  ;;  %p484_p5 = scmp.lt.s32.totalorder %s478_s14, %s478_s14 }
   0xc   :  { %p485_p6 = por %p484_p5, %p483_p4 }
   0xe   :  { %p486_p7 = pnand %p485_p6, %p479_p3 }
  0x10   :  { %489 = shalt.err (!%p486_p7)
}
  0x11   :  { %s563_s15 = smov 128   ;;  %s564_s16 = smov 8  }
  0x12   :  { %37 = dma.hbm_to_vmem [thread:$0]  %s702_s1, 2048, %s32_s28, [#allocation7], %s563_s15, %s563_s15, %s564_s16  }
  0x13   :  { %s565_s19 = smov [#allocation3]   ;;  %s566_s21 = smov [#allocation8]  }
  0x14   :  { %s22_s20 = sshll.u32 %s565_s19, 4  ;;  %s43_s22 = sshll.u32 %s566_s21, 4  ;;  %s23_s20 = int_to_ptr.vmem [resolvable:$true] %s22_s20  ;;  %s44_s22 = int_to_ptr.vmem [resolvable:$true] %s43_s22 }
  0x15   :  { %s490_s25 = scalar_lea.hbm %s701_s0, 128 }
  0x16   :  { %p491_p8 = scmp.ne.s32.totalorder %s701_s0, %s490_s25  ;;  %p494_p9 = scmp.lt.u32.totalorder %s490_s25, %s701_s0 }
  0x18   :  { %p496_p10 = pnand %p494_p9, %p491_p8 }
  0x1a   :  { %499 = shalt.err (!%p496_p10)
}
  0x1b   :  { %s500_s1 = scalar_lea.vmem %s23_s20, 128  ;;  %p505_p12 = scmp.lt.s32.totalorder %s23_s20, %s23_s20 }
  0x1c   :  { %p501_p11 = scmp.ne.s32.totalorder %s23_s20, %s500_s1  ;;  %p506_p13 = scmp.lt.s32.totalorder %s500_s1, %s500_s1 }
  0x1e   :  { %p507_p0 = por %p506_p13, %p505_p12 }
  0x20   :  { %p508_p1 = pnand %p507_p0, %p501_p11 }
  0x22   :  { %511 = shalt.err (!%p508_p1)
}
  0x23   :  { %25 = dma.hbm_to_vmem [thread:$0]  %s701_s0, 128, %s23_s20, [#allocation4]  }
  0x24   :  { %s512_s12 = scalar_lea.hbm %s703_s2, 2048 }
  0x25   :  { %p513_p2 = scmp.ne.s32.totalorder %s703_s2, %s512_s12  ;;  %p516_p3 = scmp.lt.u32.totalorder %s512_s12, %s703_s2 }
  0x27   :  { %p518_p4 = pnand %p516_p3, %p513_p2 }
  0x29   :  { %521 = shalt.err (!%p518_p4)
}
  0x2a   :  { %s522_s19 = scalar_lea.vmem %s44_s22, 2048  ;;  %p527_p6 = scmp.lt.s32.totalorder %s44_s22, %s44_s22 }
  0x2b   :  { %p523_p5 = scmp.ne.s32.totalorder %s44_s22, %s522_s19  ;;  %p528_p7 = scmp.lt.s32.totalorder %s522_s19, %s522_s19 }
  0x2d   :  { %p529_p8 = por %p528_p7, %p527_p6 }
  0x2f   :  { %p530_p9 = pnand %p529_p8, %p523_p5 }
  0x31   :  { %533 = shalt.err (!%p530_p9)
}
  0x32   :  { %49 = dma.hbm_to_vmem [thread:$0]  %s703_s2, 2048, %s44_s22, [#allocation7], %s563_s15, %s563_s15, %s564_s16  }
  0x33   :  { %556 = dma.done.wait [#allocation4], 128  }
  0x34   :  { %557 = vsyncadd [#allocation4], 4294967168 }
  0x35   :  { %558 = dma.done.wait [#allocation7], 4096  }
  0x36   :  { %559 = vsyncadd [#allocation7], 4294963200  ;;  %v567_v0 = vmov 0.0|0.0   ;;  %vm568_vm0 = vmmov 0   ;;  %v569_v1 = vmov 0.0   ;;  %v77_v2 = vld [vmem:[#allocation6] sm:$0xff]  ;;  %v282_v53 = vlaneseq }
  0x37   :  { %411 = vmatprep.subr.bf16.mxu0 %v567_v0  ;;  %435 = vmatprep.subr.bf16.mxu1 %v567_v0  ;;  %v78_v3 = vld [vmem:[#allocation6 + $0x8] sm:$0xff]  ;;  %v174_v4 = vld [vmem:[#allocation8] sm:$0xff]  ;;  %v79_v8 = vld [vmem:[#allocation6 + $0x10] sm:$0xff] }
  0x38   :  { %373 = vmatprep.mubr.msk.f32.mxu0 %vm568_vm0, %v569_v1  ;;  %408 = vmatprep.mubr.msk.f32.mxu1 %vm568_vm0, %v569_v1  ;;  %v412_v5 = vpack.c.bf16 %v78_v3, %v77_v2  ;;  %v175_v6 = vld [vmem:[#allocation8 + $0x8] sm:$0xff]  ;;  %v80_v9 = vld [vmem:[#allocation6 + $0x18] sm:$0xff]  ;;  %v176_v10 = vld [vmem:[#allocation8 + $0x10] sm:$0xff]  ;;  %v283_v57 = vshrl.u32 %v282_v53, 7 }
  0x39   :  { %v436_v7 = vpack.c.bf16 %v175_v6, %v174_v4  ;;  %v177_v11 = vld [vmem:[#allocation8 + $0x18] sm:$0xff]  ;;  %v415_v12 = vpack.c.bf16 %v80_v9, %v79_v8  ;;  %v81_v14 = vld [vmem:[#allocation6 + $0x20] sm:$0xff]  ;;  %v82_v15 = vld [vmem:[#allocation6 + $0x28] sm:$0xff] }
  0x3a   :  { %413 = vmatpush3.bf16.xpose.msra.mxu0 %v412_v5  ;;  %v439_v13 = vpack.c.bf16 %v177_v11, %v176_v10  ;;  %v178_v16 = vld [vmem:[#allocation8 + $0x20] sm:$0xff]  ;;  %v179_v17 = vld [vmem:[#allocation8 + $0x28] sm:$0xff]  ;;  %v418_v18 = vpack.c.bf16 %v82_v15, %v81_v14  ;;  %v83_v20 = vld [vmem:[#allocation6 + $0x30] sm:$0xff]  ;;  %v284_v60 = vsub.s32 0, %v283_v57 }
  0x3b   :  { %414 = vmatprep.subr.bf16.mxu0 %v567_v0  ;;  %437 = vmatpush3.bf16.xpose.msra.mxu1 %v436_v7  ;;  %v442_v19 = vpack.c.bf16 %v179_v17, %v178_v16  ;;  %v84_v21 = vld [vmem:[#allocation6 + $0x38] sm:$0xff]  ;;  %v180_v22 = vld [vmem:[#allocation8 + $0x30] sm:$0xff]  ;;  %v85_v26 = vld [vmem:[#allocation6 + $0x40] sm:$0xff] }
  0x3c   :  { %438 = vmatprep.subr.bf16.mxu1 %v567_v0  ;;  %v181_v23 = vld [vmem:[#allocation8 + $0x38] sm:$0xff]  ;;  %v421_v24 = vpack.c.bf16 %v84_v21, %v83_v20  ;;  %v86_v27 = vld [vmem:[#allocation6 + $0x48] sm:$0xff]  ;;  %v182_v28 = vld [vmem:[#allocation8 + $0x40] sm:$0xff] }
  0x3d   :  { %v445_v25 = vpack.c.bf16 %v181_v23, %v180_v22  ;;  %v183_v29 = vld [vmem:[#allocation8 + $0x48] sm:$0xff]  ;;  %v424_v30 = vpack.c.bf16 %v86_v27, %v85_v26  ;;  %v87_v32 = vld [vmem:[#allocation6 + $0x50] sm:$0xff]  ;;  %v88_v33 = vld [vmem:[#allocation6 + $0x58] sm:$0xff] }
  0x3e   :  { %v448_v31 = vpack.c.bf16 %v183_v29, %v182_v28  ;;  %v184_v34 = vld [vmem:[#allocation8 + $0x50] sm:$0xff]  ;;  %v185_v35 = vld [vmem:[#allocation8 + $0x58] sm:$0xff]  ;;  %v427_v36 = vpack.c.bf16 %v88_v33, %v87_v32  ;;  %v89_v38 = vld [vmem:[#allocation6 + $0x60] sm:$0xff] }
  0x3f   :  { %v451_v37 = vpack.c.bf16 %v185_v35, %v184_v34  ;;  %v90_v39 = vld [vmem:[#allocation6 + $0x68] sm:$0xff]  ;;  %v186_v40 = vld [vmem:[#allocation8 + $0x60] sm:$0xff]  ;;  %v91_v44 = vld [vmem:[#allocation6 + $0x70] sm:$0xff] }
  0x40   :  { %v187_v41 = vld [vmem:[#allocation8 + $0x68] sm:$0xff]  ;;  %v430_v42 = vpack.c.bf16 %v90_v39, %v89_v38  ;;  %v92_v45 = vld [vmem:[#allocation6 + $0x78] sm:$0xff]  ;;  %v188_v46 = vld [vmem:[#allocation8 + $0x70] sm:$0xff] }
  0x41   :  { %v454_v43 = vpack.c.bf16 %v187_v41, %v186_v40  ;;  %v189_v47 = vld [vmem:[#allocation8 + $0x78] sm:$0xff]  ;;  %v433_v48 = vpack.c.bf16 %v92_v45, %v91_v44 }
  0x42   :  { %416 = vmatpush3.bf16.xpose.msra.mxu0 %v415_v12  ;;  %v457_v49 = vpack.c.bf16 %v189_v47, %v188_v46  ;;  %v75_v50 = vld [vmem:[#allocation3] sm:$0xff] }
  0x43   :  { %417 = vmatprep.subr.bf16.mxu0 %v567_v0  ;;  %440 = vmatpush3.bf16.xpose.msra.mxu1 %v439_v13  ;;  %v305_v51 = vld [vmem:[%s704_s3] ss:$0 sm:$0xff] }
  0x44   :  { %441 = vmatprep.subr.bf16.mxu1 %v567_v0  ;;  %v172_v52 = vmul.f32 %v305_v51, %v75_v50  ;;  %v266_v54 = vld [vmem:[%s707_s6] sm:$0x1]  ;;  %s570_s6 = smov [#allocation9]  }
  0x45   :  { %v267_v55 = vld [vmem:[%s708_s7] sm:$0x1]  ;;  %s295_s7 = sshll.u32 %s570_s6, 4  ;;  %s296_s7 = int_to_ptr.vmem [resolvable:$true] %s295_s7 }
  0x46   :  { %v268_v56 = vmul.f32 %v267_v55, %v266_v54  ;;  %v265_v58 = vld [vmem:[%s706_s5] sm:$0x1]  ;;  %s534_s27 = scalar_lea.vmem %s296_s7, 128  ;;  %p539_p11 = scmp.lt.s32.totalorder %s296_s7, %s296_s7 }
  0x47   :  { %v306_v61 = vld [vmem:[%s705_s4] ss:$0 sm:$0xff]  ;;  %p535_p10 = scmp.ne.s32.totalorder %s296_s7, %s534_s27  ;;  %p540_p12 = scmp.lt.s32.totalorder %s534_s27, %s534_s27 }
  0x48   :  { %v269_v59 = vadd.f32 %v268_v56, %v265_v58 }
  0x49   :  { %p541_p13 = por %p540_p12, %p539_p11 }
  0x4a   :  { %419 = vmatpush3.bf16.xpose.msra.mxu0 %v418_v18  ;;  %v285_v2 = vrot.slane %v269_v59, %v284_v60 }
  0x4b   :  { %420 = vmatprep.subr.bf16.mxu0 %v567_v0  ;;  %443 = vmatpush3.bf16.xpose.msra.mxu1 %v442_v19  ;;  %p542_p0 = pnand %p541_p13, %p535_p10 }
  0x4c   :  { %444 = vmatprep.subr.bf16.mxu1 %v567_v0 }
  0x52   :  { %422 = vmatpush3.bf16.xpose.msra.mxu0 %v421_v24 }
  0x53   :  { %423 = vmatprep.subr.bf16.mxu0 %v567_v0  ;;  %446 = vmatpush3.bf16.xpose.msra.mxu1 %v445_v25 }
  0x54   :  { %447 = vmatprep.subr.bf16.mxu1 %v567_v0 }
  0x5a   :  { %425 = vmatpush3.bf16.xpose.msra.mxu0 %v424_v30 }
  0x5b   :  { %426 = vmatprep.subr.bf16.mxu0 %v567_v0  ;;  %449 = vmatpush3.bf16.xpose.msra.mxu1 %v448_v31 }
  0x5c   :  { %450 = vmatprep.subr.bf16.mxu1 %v567_v0 }
  0x62   :  { %428 = vmatpush3.bf16.xpose.msra.mxu0 %v427_v36 }
  0x63   :  { %429 = vmatprep.subr.bf16.mxu0 %v567_v0  ;;  %452 = vmatpush3.bf16.xpose.msra.mxu1 %v451_v37 }
  0x64   :  { %453 = vmatprep.subr.bf16.mxu1 %v567_v0 }
  0x6a   :  { %431 = vmatpush3.bf16.xpose.msra.mxu0 %v430_v42 }
  0x6b   :  { %432 = vmatprep.subr.bf16.mxu0 %v567_v0  ;;  %455 = vmatpush3.bf16.xpose.msra.mxu1 %v454_v43 }
  0x6c   :  { %456 = vmatprep.subr.bf16.mxu1 %v567_v0 }
  0x72   :  { %434 = vmatpush3.bf16.xpose.msra.mxu0 %v433_v48 }
  0x73   :  { %458 = vmatpush3.bf16.xpose.msra.mxu1 %v457_v49 }
  0x79   :  { %374 = vmatmul.mubr.f32.vlgmr.msra.gmra.mrb[0].mxu0 %v75_v50 }
  0x7a   :  { %409 = vmatmul.mubr.f32.vlgmr.msra.gmra.mrb[0].mxu1 %v172_v52 }
 0x14c   :  { %v159_v62 = vpop.f32.mrb[0].mxu0 }
 0x14d   :  { %v375_v63 = vpop.f32.mrb[1].mxu0  ;;  %v256_v0 = vpop.f32.mrb[0].mxu1 }
 0x14e   :  { %v279_v1 = vmul.f32 %v306_v61, %v256_v0  ;;  %v410_v3 = vpop.f32.mrb[1].mxu1 }
 0x150   :  { %v280_v4 = vadd.f32 %v279_v1, %v159_v62 }
 0x152   :  { %v287_v5 = vadd.f32 %v285_v2, %v280_v4 }
 0x154   :  { %288 = vst [vmem:[#allocation9] sm:$0xff] %v287_v5 }
 0x155   :  { %545 = shalt.err (!%p542_p0)
}
 0x156   :  { %s546_s29 = scalar_lea.hbm %s709_s8, 128 }
 0x157   :  { %p547_p1 = scmp.ne.s32.totalorder %s709_s8, %s546_s29  ;;  %p550_p2 = scmp.lt.u32.totalorder %s546_s29, %s709_s8 }
 0x159   :  { %p552_p3 = pnand %p550_p2, %p547_p1 }
 0x15b   :  { %555 = shalt.err (!%p552_p3)
}
 0x15c   :  { %298 = dma.vmem_to_hbm [thread:$0]  %s296_s7, 128, %s709_s8, [#allocation5]  }
 0x15d   :  { %560 = dma.done.wait [#allocation5], 128  }
 0x15e   :  { %561 = vsyncadd [#allocation5], 4294967168 }
 0x15f   :  { %302 = vsyncpa [#allocation4], 1 }
 0x160   :  { %303 = vsyncpa [#allocation7], 1 }
 0x161   :  { %304 = vsyncpa [#allocation5], 1 }

</bundles_post_ra>
